<compile_context>
chip_gen: v7x
topology: tpu7x:2x2x1
jax: 0.10.0
libtpu: 0.0.40
codegen_flags: <defaults>
</compile_context>

<pallas_src>
import jax
import jax.numpy as jnp
from jax.experimental import pallas as pl
from jax.experimental.pallas import tpu as pltpu


def raim_extract_kernel(x_ref, h_ref, wha_ref, bha_ref, whb_ref, bhb_ref,
                        wa_ref, wb_ref, out_ref):
    x = x_ref[...]                              # (W, I, tB) f32, batch on lanes
    h = h_ref[...]                              # (H, tB) f32

    # ---- hidden-state projections on the MXU: (out, H) @ (H, tB) ----------
    proj_a = jnp.dot(wha_ref[...], h,
                     preferred_element_type=jnp.float32) + bha_ref[...]   # (W, tB)
    proj_b = jnp.dot(whb_ref[...], h,
                     preferred_element_type=jnp.float32) + bhb_ref[...]   # (I, tB)

    # ---- alpha path: softmax over W of tanh(proj_a + <x, wa>_I) -----------
    # I-contraction = sublane reduction of a full-vreg VPU multiply.
    a_x = jnp.sum(x * wa_ref[...][None, :, :], axis=1)                    # (W, tB)
    alpha = jnp.tanh(proj_a + a_x)
    alpha = alpha - jnp.max(alpha, axis=0, keepdims=True)
    e_a = jnp.exp(alpha)
    alpha = e_a * pl.reciprocal(jnp.sum(e_a, axis=0, keepdims=True),
                                approx=True)

    # ---- beta path: softmax over I of tanh(proj_b + <x, wb>_W) ------------
    # W-contraction = W full-vreg VPU multiply/adds over the leading axis.
    b_x = jnp.sum(x * wb_ref[...][:, :, None], axis=0)                    # (I, tB)
    beta = jnp.tanh(proj_b + b_x)
    beta = beta - jnp.max(beta, axis=0, keepdims=True)
    e_b = jnp.exp(beta)
    beta = e_b * pl.reciprocal(jnp.sum(e_b, axis=0, keepdims=True),
                               approx=True)

    # ---- factored output: out[i,b] = beta[i,b] * sum_w alpha[w,b]*x[w,i,b] -
    s = jnp.sum(alpha[:, None, :] * x, axis=0)                            # (I, tB)
    out_ref[...] = (beta * s).astype(out_ref.dtype)


def _pick_block_b(B, W, I, H, vmem_budget_bytes=8 << 20):
    """Batch tile along the 128-lane axis.

    Prefers multiples of 128 that divide B (lane-dense tiles, unmasked
    stores), caps the tile by a VMEM budget (tiles are double-buffered), and
    keeps >=2 grid steps when possible so both v7x TensorCores get work and
    DMA/compute overlap exists.
    """
    per_b = 4 * (W * I + H + I)                 # f32 bytes per batch element
    cap = min(B, max(1, vmem_budget_bytes // (2 * per_b)))

    best = 0
    t = 128
    while t <= cap:
        if B % t == 0:
            best = t
        t += 128
    if best:
        if best == B and (B // 2) % 128 == 0:   # prefer >=2 grid steps
            best = B // 2
        return best
    # No 128-multiple divisor fits: use the whole batch (grid=(1,)), which
    # satisfies the "block == full dim" rule for the lane axis.
    # TODO(synk): for batches that are not a multiple of 128, pad B to the
    # next 128 multiple in the wrapper to keep lane-dense tiles and >=2 steps.
    return B


def raim_extract(x, h, params, *, block_b=None):
    B, W, I = x.shape
    H = h.shape[-1]
    f32 = jnp.float32

    # Batch-minor (lane-dense) layouts: batch goes to the lane axis.
    x_t = jnp.transpose(x, (1, 2, 0)).astype(f32)        # (W, I, B)
    h_t = jnp.transpose(h, (1, 0)).astype(f32)           # (H, B)

    # Fold + pre-cast parameters once (no per-step casts inside the kernel).
    wha = params["wha"].astype(f32)                                  # (W, H)
    bha = (params["bha"] + params["ba"]).reshape(W, 1).astype(f32)   # (W, 1)
    whb = params["whb"].astype(f32)                                  # (I, H)
    bhb = (params["bhb"] + params["bb"]).reshape(I, 1).astype(f32)   # (I, 1)
    wa = params["wa"].reshape(I, 1).astype(f32)                      # (I, 1)
    wb = params["wb"].reshape(W, 1).astype(f32)                      # (W, 1)

    tB = _pick_block_b(B, W, I, H) if block_b is None else block_b
    grid = (B // tB,)

    # Explicit VMEM limit: double-buffered x/h/out tiles + resident weights,
    # with headroom; floor 16 MiB, cap 32 MiB (within every generation's
    # default scoped limit, incl. v7x's 64 MiB physical).
    tile_bytes = 4 * tB * (W * I + H + I)
    resident_bytes = 4 * (W * H + I * H + 2 * W + 2 * I)
    vmem_bytes = int(min(32 << 20,
                         max(16 << 20, 4 * tile_bytes + resident_bytes + (2 << 20))))

    out_t = pl.pallas_call(
        raim_extract_kernel,
        out_shape=jax.ShapeDtypeStruct((I, B), f32),
        grid=grid,
        in_specs=[
            pl.BlockSpec((W, I, tB), lambda i: (0, 0, i)),   # x' tiled over batch
            pl.BlockSpec((H, tB), lambda i: (0, i)),         # h' tiled over batch
            pl.BlockSpec((W, H), lambda i: (0, 0)),          # w_h_alpha (resident)
            pl.BlockSpec((W, 1), lambda i: (0, 0)),          # b_h_alpha + b_a_alpha
            pl.BlockSpec((I, H), lambda i: (0, 0)),          # w_h_beta (resident)
            pl.BlockSpec((I, 1), lambda i: (0, 0)),          # b_h_beta + b_a_beta
            pl.BlockSpec((I, 1), lambda i: (0, 0)),          # w_a_alpha weight
            pl.BlockSpec((W, 1), lambda i: (0, 0)),          # w_a_beta weight
        ],
        out_specs=pl.BlockSpec((I, tB), lambda i: (0, i)),   # lane-dense output
        compiler_params=pltpu.CompilerParams(
            dimension_semantics=("parallel",),
            vmem_limit_bytes=vmem_bytes),
    )(x_t, h_t, wha, bha, whb, bhb, wa, wb)

    return jnp.transpose(out_t, (1, 0)).astype(x.dtype)     # (B, I)


def raim_extract_ref(x, h, params):
    """Pure-JAX reference mirroring the PyTorch forward."""
    B, W, I = x.shape
    a = jnp.tanh(h @ params["wha"].T + params["bha"]
                 + (x.reshape(-1, I) @ params["wa"].T
                    + params["ba"]).reshape(B, W))
    a = jax.nn.softmax(a, axis=-1)
    b = jnp.tanh(h @ params["whb"].T + params["bhb"]
                 + (jnp.transpose(x, (0, 2, 1)).reshape(-1, W) @ params["wb"].T
                    + params["bb"]).reshape(B, I))
    b = jax.nn.softmax(b, axis=-1)
    weight_A = a[:, :, None] * b[:, None, :]
    return jnp.sum(weight_A * x, axis=1)


def init_params(key, input_size, window_size, hidden_size, dtype=jnp.float32):
    ks = jax.random.split(key, 8)
    s = 0.1
    return {
        # w_h_alpha: Linear(hidden_size -> window_size): weight (W, H), bias (W,)
        "wha": s * jax.random.normal(ks[0], (window_size, hidden_size), dtype),
        "bha": s * jax.random.normal(ks[1], (window_size,), dtype),
        # w_a_alpha: Linear(input_size -> 1): weight (1, I), bias (1,)
        "wa":  s * jax.random.normal(ks[2], (1, input_size), dtype),
        "ba":  s * jax.random.normal(ks[3], (1,), dtype),
        # w_h_beta: Linear(hidden_size -> input_size): weight (I, H), bias (I,)
        "whb": s * jax.random.normal(ks[4], (input_size, hidden_size), dtype),
        "bhb": s * jax.random.normal(ks[5], (input_size,), dtype),
        # w_a_beta: Linear(window_size -> 1): weight (1, W), bias (1,)
        "wb":  s * jax.random.normal(ks[6], (1, window_size), dtype),
        "bb":  s * jax.random.normal(ks[7], (1,), dtype),
    }


if __name__ == "__main__":
    # B = 256 keeps the data tiny but exercises the lane-dense tiled path:
    # the picker chooses tB = 128 -> grid=(2,), megacore-parallel on v7x.
    batch, window_size, input_size, hidden_size = 256, 8, 16, 32

    key = jax.random.PRNGKey(0)
    k_x, k_h, k_p = jax.random.split(key, 3)

    x = jax.random.normal(k_x, (batch, window_size, input_size), jnp.float32)
    h = jax.random.normal(k_h, (batch, hidden_size), jnp.float32)
    params = init_params(k_p, input_size, window_size, hidden_size)

    out = raim_extract(x, h, params)
    out = jax.block_until_ready(out)

    ref = raim_extract_ref(x, h, params)
    assert out.shape == (batch, input_size)
    # Tolerance loosened slightly vs. exact math: the softmax denominators use
    # the EUP approximate reciprocal (pl.reciprocal(approx=True)).
    assert jnp.allclose(out, ref, atol=5e-3, rtol=5e-3), (
        float(jnp.max(jnp.abs(out - ref))))

    print("KERNEL_OK")
</pallas_src>

<mosaic_0001>
module attributes {stable_mosaic.version = 11 : i64} {
  func.func @raim_extract_kernel(%arg0: i32, %arg1: memref<8x16x128xf32, #tpu.memory_space<vmem>>, %arg2: memref<32x128xf32, #tpu.memory_space<vmem>>, %arg3: memref<8x32xf32, #tpu.memory_space<vmem>>, %arg4: memref<8x1xf32, #tpu.memory_space<vmem>>, %arg5: memref<16x32xf32, #tpu.memory_space<vmem>>, %arg6: memref<16x1xf32, #tpu.memory_space<vmem>>, %arg7: memref<16x1xf32, #tpu.memory_space<vmem>>, %arg8: memref<8x1xf32, #tpu.memory_space<vmem>>, %arg9: memref<16x128xf32, #tpu.memory_space<vmem>>) attributes {dimension_semantics = [#tpu.dimension_semantics<parallel>], iteration_bounds = array<i64: 2>, scalar_prefetch = 0 : i64, scratch_operands = 0 : i64, tpu.core_type = #tpu.core_type<tc>, window_params = [{transform_indices = @transform_0, window_bounds = array<i64: 8, 16, 128>}, {transform_indices = @transform_1, window_bounds = array<i64: 32, 128>}, {pipeline_mode = #tpu.pipeline_mode<synchronous>, transform_indices = @transform_2, window_bounds = array<i64: 8, 32>}, {pipeline_mode = #tpu.pipeline_mode<synchronous>, transform_indices = @transform_3, window_bounds = array<i64: 8, 1>}, {pipeline_mode = #tpu.pipeline_mode<synchronous>, transform_indices = @transform_4, window_bounds = array<i64: 16, 32>}, {pipeline_mode = #tpu.pipeline_mode<synchronous>, transform_indices = @transform_5, window_bounds = array<i64: 16, 1>}, {pipeline_mode = #tpu.pipeline_mode<synchronous>, transform_indices = @transform_6, window_bounds = array<i64: 16, 1>}, {pipeline_mode = #tpu.pipeline_mode<synchronous>, transform_indices = @transform_7, window_bounds = array<i64: 8, 1>}, {transform_indices = @transform_8, window_bounds = array<i64: 16, 128>}]} {
    %c0 = arith.constant 0 : index
    %c0_0 = arith.constant 0 : index
    %c0_1 = arith.constant 0 : index
    %0 = vector.load %arg1[%c0, %c0_0, %c0_1] : memref<8x16x128xf32, #tpu.memory_space<vmem>>, vector<8x16x128xf32>
    %c0_2 = arith.constant 0 : index
    %c0_3 = arith.constant 0 : index
    %1 = vector.load %arg2[%c0_2, %c0_3] : memref<32x128xf32, #tpu.memory_space<vmem>>, vector<32x128xf32>
    %c0_4 = arith.constant 0 : index
    %c0_5 = arith.constant 0 : index
    %2 = vector.load %arg3[%c0_4, %c0_5] : memref<8x32xf32, #tpu.memory_space<vmem>>, vector<8x32xf32>
    %cst = arith.constant dense<0.000000e+00> : vector<8x128xf32>
    %3 = tpu.matmul %2, %1, %cst {dimension_numbers = #tpu.dot_dimension_numbers<[1], [0], [0], [1], [0, 0, 1, 1], [], []>} : vector<8x32xf32>, vector<32x128xf32>, vector<8x128xf32> -> vector<8x128xf32>
    %c0_6 = arith.constant 0 : index
    %c0_7 = arith.constant 0 : index
    %4 = vector.load %arg4[%c0_6, %c0_7] : memref<8x1xf32, #tpu.memory_space<vmem>>, vector<8x1xf32>
    %5 = vector.broadcast %4 : vector<8x1xf32> to vector<8x128xf32>
    %6 = arith.addf %3, %5 : vector<8x128xf32>
    %c0_8 = arith.constant 0 : index
    %c0_9 = arith.constant 0 : index
    %7 = vector.load %arg5[%c0_8, %c0_9] : memref<16x32xf32, #tpu.memory_space<vmem>>, vector<16x32xf32>
    %cst_10 = arith.constant dense<0.000000e+00> : vector<16x128xf32>
    %8 = tpu.matmul %7, %1, %cst_10 {dimension_numbers = #tpu.dot_dimension_numbers<[1], [0], [0], [1], [0, 0, 1, 1], [], []>} : vector<16x32xf32>, vector<32x128xf32>, vector<16x128xf32> -> vector<16x128xf32>
    %c0_11 = arith.constant 0 : index
    %c0_12 = arith.constant 0 : index
    %9 = vector.load %arg6[%c0_11, %c0_12] : memref<16x1xf32, #tpu.memory_space<vmem>>, vector<16x1xf32>
    %10 = vector.broadcast %9 : vector<16x1xf32> to vector<16x128xf32>
    %11 = arith.addf %8, %10 : vector<16x128xf32>
    %c0_13 = arith.constant 0 : index
    %c0_14 = arith.constant 0 : index
    %12 = vector.load %arg7[%c0_13, %c0_14] : memref<16x1xf32, #tpu.memory_space<vmem>>, vector<16x1xf32>
    %13 = vector.shape_cast %12 : vector<16x1xf32> to vector<1x16x1xf32>
    %14 = vector.broadcast %13 : vector<1x16x1xf32> to vector<8x16x128xf32>
    %15 = arith.mulf %0, %14 : vector<8x16x128xf32>
    %cst_15 = arith.constant dense<0.000000e+00> : vector<8x128xf32>
    %16 = vector.multi_reduction <add>, %15, %cst_15 [1] : vector<8x16x128xf32> to vector<8x128xf32>
    %17 = arith.addf %6, %16 : vector<8x128xf32>
    %18 = math.tanh %17 : vector<8x128xf32>
    %cst_16 = arith.constant dense<0xFF800000> : vector<128xf32>
    %19 = vector.multi_reduction <maximumf>, %18, %cst_16 [0] : vector<8x128xf32> to vector<128xf32>
    %20 = vector.shape_cast %19 : vector<128xf32> to vector<1x128xf32>
    %21 = vector.broadcast %20 : vector<1x128xf32> to vector<8x128xf32>
    %22 = arith.subf %18, %21 : vector<8x128xf32>
    %23 = math.exp %22 : vector<8x128xf32>
    %cst_17 = arith.constant dense<0.000000e+00> : vector<128xf32>
    %24 = vector.multi_reduction <add>, %23, %cst_17 [0] : vector<8x128xf32> to vector<128xf32>
    %25 = vector.shape_cast %24 : vector<128xf32> to vector<1x128xf32>
    %26 = tpu.reciprocal %25 {approx = true} : vector<1x128xf32> -> vector<1x128xf32>
    %27 = vector.broadcast %26 : vector<1x128xf32> to vector<8x128xf32>
    %28 = arith.mulf %23, %27 : vector<8x128xf32>
    %c0_18 = arith.constant 0 : index
    %c0_19 = arith.constant 0 : index
    %29 = vector.load %arg8[%c0_18, %c0_19] : memref<8x1xf32, #tpu.memory_space<vmem>>, vector<8x1xf32>
    %30 = vector.shape_cast %29 : vector<8x1xf32> to vector<8x1x1xf32>
    %31 = vector.broadcast %30 : vector<8x1x1xf32> to vector<8x16x128xf32>
    %32 = arith.mulf %0, %31 : vector<8x16x128xf32>
    %cst_20 = arith.constant dense<0.000000e+00> : vector<16x128xf32>
    %33 = vector.multi_reduction <add>, %32, %cst_20 [0] : vector<8x16x128xf32> to vector<16x128xf32>
    %34 = arith.addf %11, %33 : vector<16x128xf32>
    %35 = math.tanh %34 : vector<16x128xf32>
    %cst_21 = arith.constant dense<0xFF800000> : vector<128xf32>
    %36 = vector.multi_reduction <maximumf>, %35, %cst_21 [0] : vector<16x128xf32> to vector<128xf32>
    %37 = vector.shape_cast %36 : vector<128xf32> to vector<1x128xf32>
    %38 = vector.broadcast %37 : vector<1x128xf32> to vector<16x128xf32>
    %39 = arith.subf %35, %38 : vector<16x128xf32>
    %40 = math.exp %39 : vector<16x128xf32>
    %cst_22 = arith.constant dense<0.000000e+00> : vector<128xf32>
    %41 = vector.multi_reduction <add>, %40, %cst_22 [0] : vector<16x128xf32> to vector<128xf32>
    %42 = vector.shape_cast %41 : vector<128xf32> to vector<1x128xf32>
    %43 = tpu.reciprocal %42 {approx = true} : vector<1x128xf32> -> vector<1x128xf32>
    %44 = vector.broadcast %43 : vector<1x128xf32> to vector<16x128xf32>
    %45 = arith.mulf %40, %44 : vector<16x128xf32>
    %46 = vector.shape_cast %28 : vector<8x128xf32> to vector<8x1x128xf32>
    %47 = vector.broadcast %46 : vector<8x1x128xf32> to vector<8x16x128xf32>
    %48 = arith.mulf %47, %0 : vector<8x16x128xf32>
    %cst_23 = arith.constant dense<0.000000e+00> : vector<16x128xf32>
    %49 = vector.multi_reduction <add>, %48, %cst_23 [0] : vector<8x16x128xf32> to vector<16x128xf32>
    %50 = arith.mulf %45, %49 : vector<16x128xf32>
    %c0_24 = arith.constant 0 : index
    %c0_25 = arith.constant 0 : index
    %51 = vector.load %arg9[%c0_24, %c0_25] : memref<16x128xf32, #tpu.memory_space<vmem>>, vector<16x128xf32>
    tpu.vector_store %arg9[%c0_24, %c0_25], %50 {strides = array<i32>} : memref<16x128xf32, #tpu.memory_space<vmem>>, vector<16x128xf32>,
    return
  }
  func.func @transform_0(%arg0: i32) -> (i32, i32, i32) {
    %c0_i32 = arith.constant 0 : i32
    %c0_i32_0 = arith.constant 0 : i32
    %c0_i32_1 = arith.constant 0 : i32
    return %c0_i32, %c0_i32_0, %arg0 : i32, i32, i32
  }
  func.func @transform_1(%arg0: i32) -> (i32, i32) {
    %c0_i32 = arith.constant 0 : i32
    %c0_i32_0 = arith.constant 0 : i32
    return %c0_i32, %arg0 : i32, i32
  }
  func.func @transform_2(%arg0: i32) -> (i32, i32) {
    %c0_i32 = arith.constant 0 : i32
    %c0_i32_0 = arith.constant 0 : i32
    %c0_i32_1 = arith.constant 0 : i32
    return %c0_i32, %c0_i32_0 : i32, i32
  }
  func.func @transform_3(%arg0: i32) -> (i32, i32) {
    %c0_i32 = arith.constant 0 : i32
    %c0_i32_0 = arith.constant 0 : i32
    %c0_i32_1 = arith.constant 0 : i32
    return %c0_i32, %c0_i32_0 : i32, i32
  }
  func.func @transform_4(%arg0: i32) -> (i32, i32) {
    %c0_i32 = arith.constant 0 : i32
    %c0_i32_0 = arith.constant 0 : i32
    %c0_i32_1 = arith.constant 0 : i32
    return %c0_i32, %c0_i32_0 : i32, i32
  }
  func.func @transform_5(%arg0: i32) -> (i32, i32) {
    %c0_i32 = arith.constant 0 : i32
    %c0_i32_0 = arith.constant 0 : i32
    %c0_i32_1 = arith.constant 0 : i32
    return %c0_i32, %c0_i32_0 : i32, i32
  }
  func.func @transform_6(%arg0: i32) -> (i32, i32) {
    %c0_i32 = arith.constant 0 : i32
    %c0_i32_0 = arith.constant 0 : i32
    %c0_i32_1 = arith.constant 0 : i32
    return %c0_i32, %c0_i32_0 : i32, i32
  }
  func.func @transform_7(%arg0: i32) -> (i32, i32) {
    %c0_i32 = arith.constant 0 : i32
    %c0_i32_0 = arith.constant 0 : i32
    %c0_i32_1 = arith.constant 0 : i32
    return %c0_i32, %c0_i32_0 : i32, i32
  }
  func.func @transform_8(%arg0: i32) -> (i32, i32) {
    %c0_i32 = arith.constant 0 : i32
    %c0_i32_0 = arith.constant 0 : i32
    return %c0_i32, %arg0 : i32, i32
  }
}

</mosaic_0001>

<bundles_post_ra>
// kernel: tpu_custom_call.1
= control target key start
LH: loop header
LB: loop body
LE: loop exit
PB: predicated region body
PF: predicated region fallthrough
CT: control target
= control target key end

     0   :  { %s1814_s0 = inlined_call_operand.hbm [shape: f32[8,16,256], index: 0, kind: input, shape index: {}]   ;;  %s1815_s1 = inlined_call_operand.hbm [shape: f32[32,256], index: 1, kind: input, shape index: {}]   ;;  %s1816_s2 = inlined_call_operand.vmem [shape: f32[8,32], index: 2, kind: input, shape index: {}]   ;;  %s1817_s3 = inlined_call_operand.vmem [shape: f32[8,1], index: 3, kind: input, shape index: {}]   ;;  %s1818_s4 = inlined_call_operand.vmem [shape: f32[16,32], index: 4, kind: input, shape index: {}]   ;;  %s1819_s5 = inlined_call_operand.vmem [shape: f32[16,1], index: 5, kind: input, shape index: {}]   ;;  %s1820_s6 = inlined_call_operand.vmem [shape: f32[16,1], index: 6, kind: input, shape index: {}]   ;;  %s1821_s7 = inlined_call_operand.vmem [shape: f32[8,1], index: 7, kind: input, shape index: {}]   ;;  %s1822_s8 = inlined_call_operand.hbm [shape: f32[16,256], index: 8, kind: output, shape index: {}]  }
   0x1   :  { %1830 = sst [smem:[#allocation14_spill]] %s1814_s0 }
   0x2   :  { %13 = vsyncpa [#allocation3], 0 }
   0x3   :  { %15 = vsyncpa [#allocation3 + $0x1], 0 }
   0x4   :  { %16 = vsyncpa [#allocation6], 0 }
   0x5   :  { %18 = vsyncpa [#allocation6 + $0x1], 0 }
   0x6   :  { %19 = vsyncpa [#allocation4], 0 }
   0x7   :  { %21 = vsyncpa [#allocation4 + $0x1], 0  ;;  %s1426_s27 = smov 0   ;;  %s1428_s28 = smov 0  }
   0x8   :  { %s1430_s29 = smov 0   ;;  %s1432_s30 = smov 0  }
   0x9 LB: > { %1831 = sst [smem:[#allocation11_spill]] %s1361_s29  ;;  %s1447_s9 = sadd.s32 4294967295, %s1365_s30   ;;  %s1365_s30 = sphi %s1432_s30, %s1848_s30   ;;  %s1361_s29 = sphi %s1430_s29, %s1850_s29   ;;  %s1357_s28 = sphi %s1428_s28, %s1852_s28   ;;  %s1353_s27 = sphi %s1426_s27, %s1851_s27  }
   0xa   : > { %s1089_s10 = sadd.s32 4294967294, %s1365_s30   ;;  %s1451_s11 = sadd.s32 1, %s1365_s30  }
   0xb   : > { %1832 = sst [smem:[#allocation12_spill]] %s1451_s11  ;;  %s34_s12 = sadd.s32 1, %s1361_s29 }
   0xc   : > { %s31_s13 = ssub.s32 %s1365_s30, %s1451_s11  ;;  %p41_p0 = scmp.ne.s32.totalorder %s1361_s29, %s1357_s28 }
   0xd   : > { %p32_p1 = scmp.eq.s32.totalorder %s31_s13, 0  ;;  %p42_p2 = scmp.eq.s32.totalorder %s1365_s30, 0 }
   0xe   : > { %p47_p3 = scmp.ne.s32.totalorder %s1357_s28, %s1353_s27  ;;  %p48_p4 = scmp.eq.s32.totalorder %s1447_s9, 0 }
   0xf   : > { %s1463_s14 = scalar_select %p32_p1, %s1361_s29, %s34_s12  }
  0x10   : > { %p1465_p5 = por %p42_p2, %p41_p0  ;;  %p1469_p6 = por %p48_p4, %p47_p3 }
  0x11   : > { %1833 = sst [smem:[#allocation13_spill]] %s1463_s14  ;;  %p223_p7 = scmp.eq.s32.totalorder %s1447_s9, 1 }
  0x12   : > { %s1835_s16 = scalar_select %p1469_p6, 1, 0 }
  0x13   : > { %p229_p8 = scmp.eq.s32.totalorder %s1089_s10, 1  ;;  %p1171_p10 = scmp.lt.s32.totalorder %s1365_s30, 2 }
  0x14   : > { %p1476_p11 = por %p223_p7, %p41_p0  ;;  %s1485_s19 = sand.u32 1, %s1361_s29  }
  0x15   : > { %p1480_p12 = por %p229_p8, %p47_p3  ;;  %s1823_s20 = sshll.u32 %s1365_s30, 7 }
  0x16   : > { %s1836_s17 = scalar_select %p1476_p11, 1, 0 }
  0x17   : > { %s1837_s18 = scalar_select %p1480_p12, 1, 0 }
  0x18   : > { %s1092_s21 = sshll.u32 %s1485_s19, 7  ;;  %s1838_s0 = sld [smem:[#allocation14_spill]] }
  0x19   : > { %s271_s25 = scalar_lea.vmem [#allocation2], %s1092_s21  ;;  %p1498_p13 = pnand %p1171_p10, %p1465_p5 }
  0x1a   : > { %s277_s26 = sshll.u32 %s271_s25, 4  ;;  %s268_s12 = scalar_lea.sflag [#allocation3], %s1485_s19  ;;  %s1502_s26 = int_to_ptr.vmem [resolvable:$true] %s277_s26 }
  0x1b   : > { %p1237_p2 = pneg %p1498_p13 }
  0x1e   : > { %s1494_s24 = scalar_lea.hbm %s1838_s0, %s1823_s20  ;;  %s1240_s22 = scalar_lea.hbm %s1838_s0, 4096 }
  0x1f   : > { %s1235_s13 = scalar_lea.hbm %s1494_s24, 2048  ;;  %p1241_p5 = scmp.lt.u32.totalorder %s1494_s24, %s1838_s0 }
  0x20   : > { %p1236_p1 = scmp.ne.s32.totalorder %s1494_s24, %s1235_s13  ;;  %p1242_p7 = scmp.lt.u32.totalorder %s1240_s22, %s1235_s13 }
  0x21   : > { %p1244_p10 = scmp.lt.u32.totalorder %s1235_s13, %s1494_s24 }
  0x22   : > { %p1238_p3 = pnand %p1237_p2, %p1236_p1  ;;  %p1243_p8 = por %p1242_p7, %p1241_p5 }
  0x24   : > { %p1239_p4 = pneg %p1238_p3  ;;  %p1245_p9 = por %p1244_p10, %p1243_p8 }
  0x26   : > { %p1246_p0 = pnand %p1245_p9, %p1239_p4 }
  0x28   : > { %1249 = shalt.err (!%p1246_p0)
}
  0x29   : > { %s1250_s20 = scalar_lea.vmem %s1502_s26, 2048  ;;  %s1367_s21 = smov [#allocation2]  }
  0x2a   : > { %p1251_p1 = scmp.ne.s32.totalorder %s1502_s26, %s1250_s20  ;;  %s1255_s15 = sshll.u32 %s1367_s21, 4  ;;  %s1256_s15 = int_to_ptr.vmem [resolvable:$false] %s1255_s15 }
  0x2b   : > { %s1257_s23 = scalar_lea.vmem %s1256_s15, 4096  ;;  %p1258_p11 = scmp.lt.s32.totalorder %s1502_s26, %s1256_s15 }
  0x2c   : > { %p1253_p3 = pnand %p1251_p1, %p1237_p2  ;;  %p1259_p5 = scmp.lt.s32.totalorder %s1257_s23, %s1250_s20 }
  0x2e   : > { %p1254_p12 = pneg %p1253_p3  ;;  %p1260_p7 = por %p1259_p5, %p1258_p11 }
  0x30   : > { %p1261_p8 = pnand %p1260_p7, %p1254_p12 }
  0x32   : > { %1264 = shalt.err (!%p1261_p8)
}
  0x33   : > { %s1828_s13 = smov 256   ;;  %s1369_s22 = smov 128  }
  0x34   : > { %s1370_s25 = smov 8   ;;  %p305_p9 = scmp.lt.s32.totalorder %s1365_s30, 3 }
  0x35   : > { %1163 = dma.hbm_to_vmem [thread:$0]  (!%p1498_p13), %s1494_s24, 2048, %s1502_s26, %s268_s12, %s1828_s13, %s1369_s22, %s1370_s25  }
  0x36   : > { %s1094_s20 = sshll.u32 %s1485_s19, 5  ;;  %s1840_s21 = sshll.u32 %s1365_s30, 7 }
  0x37   : > { %s1543_s0 = scalar_lea.hbm %s1815_s1, %s1840_s21  ;;  %p1841_p11 = scmp.ge.s32.totalorder %s1365_s30, 1 }
  0x38   : > { %s291_s29 = scalar_lea.vmem [#allocation5], %s1094_s20  ;;  %s288_s24 = scalar_lea.sflag [#allocation6], %s1485_s19 }
  0x39   : > { %p1547_p12 = pnand %p1841_p11, %p305_p9  ;;  %s297_s11 = sshll.u32 %s291_s29, 4  ;;  %s1551_s11 = int_to_ptr.vmem [resolvable:$true] %s297_s11 }
  0x3a   : > { %s1265_s26 = scalar_lea.hbm %s1543_s0, 512  ;;  %s1270_s15 = scalar_lea.hbm %s1815_s1, 1024 }
  0x3b   : > { %p1266_p0 = scmp.ne.s32.totalorder %s1543_s0, %s1265_s26  ;;  %p1271_p1 = scmp.lt.u32.totalorder %s1543_s0, %s1815_s1 }
  0x3c   : > { %p1272_p3 = scmp.lt.u32.totalorder %s1270_s15, %s1265_s26  ;;  %p1274_p7 = scmp.lt.u32.totalorder %s1265_s26, %s1543_s0 }
  0x3d   : > { %p1268_p4 = pnand %p1266_p0, %p1237_p2 }
  0x3e   : > { %p1273_p5 = por %p1272_p3, %p1271_p1 }
  0x3f   : > { %p1269_p10 = pneg %p1268_p4 }
  0x40   : > { %p1275_p8 = por %p1274_p7, %p1273_p5 }
  0x42   : > { %p1276_p9 = pnand %p1275_p8, %p1269_p10 }
  0x44   : > { %1279 = shalt.err (!%p1276_p9)
}
  0x45   : > { %s1280_s29 = scalar_lea.vmem %s1551_s11, 512  ;;  %s1371_s20 = smov [#allocation5]  }
  0x46   : > { %p1281_p11 = scmp.ne.s32.totalorder %s1551_s11, %s1280_s29  ;;  %s1285_s12 = sshll.u32 %s1371_s20, 4  ;;  %s1286_s12 = int_to_ptr.vmem [resolvable:$false] %s1285_s12 }
  0x47   : > { %s1287_s13 = scalar_lea.vmem %s1286_s12, 1024  ;;  %p1288_p6 = scmp.lt.s32.totalorder %s1551_s11, %s1286_s12 }
  0x48   : > { %p1283_p0 = pnand %p1281_p11, %p1237_p2  ;;  %p1289_p1 = scmp.lt.s32.totalorder %s1287_s13, %s1280_s29 }
  0x4a   : > { %p1284_p4 = pneg %p1283_p0  ;;  %p1290_p3 = por %p1289_p1, %p1288_p6 }
  0x4c   : > { %p1291_p5 = pnand %p1290_p3, %p1284_p4 }
  0x4e   : > { %1294 = shalt.err (!%p1291_p5)
}
  0x4f   : > { %s1843_s26 = smov 256   ;;  %309 = sbr.rel (%p1547_p12) target bundleno = 421 (0x1a5), region = 52 }
  0x50   : > { %1166 = dma.hbm_to_vmem [thread:$0]  (!%p1498_p13), %s1543_s0, 512, %s1551_s11, %s288_s24, %s1843_s26, %s1369_s22, %s1370_s25  }
  0x51   : > { %s1585_s21 = sand.u32 (!%p1547_p12), 1, %s1357_s28   ;;  %p1844_p6 = scmp.ne.s32.totalorder (!%p1547_p12), %s1835_s16, 0 }
  0x52   : > { %s1097_s15 = sshll.u32 (!%p1547_p12), %s1585_s21, 7  ;;  %s312_s23 = scalar_lea.sflag (!%p1547_p12), [#allocation3], %s1585_s21 }
  0x53   : > { %s1589_s10 = scalar_lea.vmem (!%p1547_p12), [#allocation2], %s1097_s15 }
  0x56   : > { %1340 = dma.done.wait (%p1844_p6), %s312_s23, 2048  }
  0x57   : > { %1342 = vsyncadd (%p1844_p6), %s312_s23, 4294965248  ;;  %s1098_s0 = sshll.u32 %s1585_s21, 5  ;;  %s321_s11 = scalar_lea.sflag [#allocation6], %s1585_s21 }
  0x58   : > { %s324_s14 = scalar_lea.vmem [#allocation5], %s1098_s0 }
  0x59   : > { %1344 = dma.done.wait (%p1844_p6), %s321_s11, 512  }
  0x5a   : > { %1346 = vsyncadd (%p1844_p6), %s321_s11, 4294966784  ;;  %v1372_v0 = vmov 0.0|0.0   ;;  %vm1373_vm0 = vmmov 0   ;;  %v1374_v1 = vmov 0.0   ;;  %v690_v2 = vlaneseq  ;;  %v378_v8 = vld [vmem:[%s324_s14] sm:$0xff]  ;;  %v379_v9 = vld [vmem:[%s324_s14 + $0x8] sm:$0xff] }
  0x5b   : > { %1140 = vmatprep.subr.bf16.mxu0 %v1372_v0  ;;  %1126 = vmatprep.mubr.msk.f32.mxu0 %vm1373_vm0, %v1374_v1  ;;  %v1375_v3 = vmov 0   ;;  %v1376_v4 = vmov 1966171168   ;;  %vm389_vm1 = vcmask 261120   ;;  %v380_v10 = vld [vmem:[%s324_s14 + $0x10] sm:$0xff]  ;;  %v1141_v12 = vpack.c.bf16 %v379_v9, %v378_v8  ;;  %v381_v13 = vld [vmem:[%s324_s14 + $0x18] sm:$0xff] }
  0x5c   : > { %1216 = vset.pattern.permute.xlu0 %v1375_v3  ;;  %1217 = vset.pattern.permute.xlu1 %v1375_v3  ;;  %v688_v5 = vunpack.c.l.s4 %v1376_v4  ;;  %v691_v6 = vshrl.u32 %v690_v2, 7  ;;  %v463_v14 = vld [vmem:[%s1818_s4] sm:$0xff]  ;;  %v1144_v15 = vpack.c.bf16 %v381_v13, %v380_v10  ;;  %v559_v21 = vld [vmem:[%s1820_s6 + $0x8] sm:$0xff]  ;;  %v1650_v47 = vld [vmem:[%s1589_s10 + $0x10] sm:$0xff]  ;;  %vm650_vm2 = vcmask 1041409   ;;  %s1104_s25 = sshll.u32 %s1447_s9, 7 }
  0x5d   : > { %1137 = vmatprep.mubr.msk.f32.mxu1 %vm389_vm1, %v463_v14  ;;  %v558_v16 = vld [vmem:[%s1820_s6] sm:$0xff]  ;;  %1142 = vmatpush3.bf16.msra.mxu0 %v1141_v12  ;;  %v464_v27 = vld [vmem:[%s1818_s4 + $0x8] sm:$0xff]  ;;  %v1653_v48 = vld [vmem:[%s1589_s10 + $0x18] sm:$0xff]  ;;  %vm652_vm3 = vcmask 1042434   ;;  %vm654_vm4 = vcmask 1043459   ;;  %vm656_vm5 = vcmask 1044484   ;;  %s1768_s13 = scalar_lea.hbm %s1822_s8, %s1104_s25 }
  0x5e   : > { %v689_v7 = vunpack.c.0.s8 %v688_v5  ;;  %1147 = vmatprep.subr.bf16.mxu1 %v1141_v12  ;;  %v383_v17 = vld [vmem:[%s1817_s3] sm:$0xff]  ;;  %1143 = vmatprep.subr.bf16.mxu0 %v1372_v0  ;;  %v1620_v23 = vsub.s32 0, %v691_v6  ;;  %v466_v45 = vld [vmem:[%s1819_s5 + $0x8] sm:$0xff]  ;;  %v1672_v58 = vld [vmem:[%s1589_s10 + $0x30] sm:$0xff]  ;;  %vm658_vm6 = vcmask 1045509   ;;  %vm660_vm7 = vcmask 1046534  }
  0x5f   : > { %v684_v18 = vld [vmem:[%s1821_s7] sm:$0xff]  ;;  %1149 = vmatpush3.bf16.msra.mxu1 %v1141_v12  ;;  %562 = vperm.xlu0 %1216, %v558_v16   ;;  %v1659_v50 = vld [vmem:[%s1589_s10 + $0x8] sm:$0xff]  ;;  %v1675_v59 = vld [vmem:[%s1589_s10 + $0x38] sm:$0xff]  ;;  %vm662_vm8 = vcmask 1047559   ;;  %s981_s9 = scalar_lea.sflag [#allocation4], %s1585_s21  ;;  %p1845_p2 = scmp.ne.s32.totalorder %s1836_s17, 0 }
  0x60   : > { %v1601_v11 = vsub.s32 %v689_v7, %v691_v6  ;;  %v686_v20 = vcombine.high %v684_v18, %v684_v18  ;;  %1151 = vmatprep.subr.bf16.mxu1 %v1144_v15  ;;  %386 = vperm.xlu1 %1217, %v383_v17   ;;  %v382_v26 = vld [vmem:[%s1816_s2] sm:$0xff]  ;;  %v1669_v57 = vld [vmem:[%s1589_s10 + $0x28] sm:$0xff]  ;;  %v1688_v7 = vld [vmem:[%s1589_s10 + $0x50] sm:$0xff]  ;;  %s1377_s15 = smov [#allocation7]  }
  0x61   : > { %1145 = vmatpush3.bf16.msra.mxu0 %v1144_v15  ;;  %v465_v44 = vld [vmem:[%s1819_s5] sm:$0xff]  ;;  %v1685_v3 = vld [vmem:[%s1589_s10 + $0x48] sm:$0xff]  ;;  %v1691_v8 = vld [vmem:[%s1589_s10 + $0x58] sm:$0xff]  ;;  %s1299_s23 = sshll.u32 %s1377_s15, 4  ;;  %s1300_s23 = int_to_ptr.vmem [resolvable:$false] %s1299_s23 }
  0x62   : > { %v693_v19 = vrot.slane %v684_v18, %v1601_v11  ;;  %v700_v25 = vrot.slane %v686_v20, %v1601_v11  ;;  %v1656_v49 = vld [vmem:[%s1589_s10] sm:$0xff]  ;;  %v1703_v20 = vld [vmem:[%s1589_s10 + $0x68] sm:$0xff]  ;;  %s1301_s0 = scalar_lea.vmem %s1300_s23, 512 }
  0x63   : > { %1153 = vmatpush3.bf16.msra.mxu1 %v1144_v15  ;;  %567 = vperm.xlu0 %1216, %v559_v21   ;;  %v1666_v56 = vld [vmem:[%s1589_s10 + $0x20] sm:$0xff] }
  0x64   : > { %v701_v22 = vcombine.high %v693_v19, %v693_v19  ;;  %v709_v24 = vrot.slane %v693_v19, %v1601_v11  ;;  %v702_v31 = vcombine.high %v700_v25, %v700_v25  ;;  %v716_v32 = vrot.slane %v700_v25, %v1601_v11  ;;  %1127 = vmatmul.mubr.msk.f32.vlgmr.msra.gmra.mrb[0].mxu0 %vm389_vm1, %v382_v26  ;;  %v1682_v2 = vld [vmem:[%s1589_s10 + $0x40] sm:$0xff]  ;;  %v1706_v25 = vld [vmem:[%s1589_s10 + $0x70] sm:$0xff]  ;;  %v1709_v26 = vld [vmem:[%s1589_s10 + $0x78] sm:$0xff] }
  0x65   : > { %v1700_v19 = vld [vmem:[%s1589_s10 + $0x60] sm:$0xff]  ;;  %s1099_s10 = sshll.u32 %s1585_s21, 4 }
  0x66   : > { %v723_v28 = vrot.slane %v701_v22, %v1601_v11  ;;  %v738_v29 = vrot.slane %v709_v24, %v1620_v23  ;;  %v731_v30 = vcombine.high %v709_v24, %v709_v24  ;;  %1138 = vmatmul.mubr.msk.f32.vlgmr.msra.gmra.mrb[0].mxu1 %vm389_vm1, %v464_v27  ;;  %v730_v37 = vrot.slane %v702_v31, %v1601_v11  ;;  %s361_s24 = scalar_lea.vmem [#allocation7], %s1099_s10 }
  0x67   : > { %v754_v38 = vrot.slane %v716_v32, %v1620_v23  ;;  %v732_v39 = vcombine.high %v716_v32, %v716_v32  ;;  %s993_s29 = sshll.u32 %s361_s24, 4  ;;  %s1770_s29 = int_to_ptr.vmem [resolvable:$true] %s993_s29 }
  0x68   : > { %v742_v33 = vrot.slane %v723_v28, %v1620_v23  ;;  %768 = vperm.xlu1 %1217, %v738_v29   ;;  %v733_v34 = vcombine.high %v723_v28, %v723_v28  ;;  %v746_v35 = vrot.slane %v731_v30, %v1620_v23  ;;  %v758_v40 = vrot.slane %v730_v37, %v1620_v23  ;;  %s1295_s26 = scalar_lea.vmem %s1770_s29, 256  ;;  %p1302_p7 = scmp.lt.s32.totalorder %s1770_s29, %s1300_s23 }
  0x69   : > { %v734_v41 = vcombine.high %v730_v37, %v730_v37  ;;  %v762_v42 = vrot.slane %v732_v39, %v1620_v23  ;;  %p1296_p13 = scmp.ne.s32.totalorder %s1770_s29, %s1295_s26  ;;  %p1303_p8 = scmp.lt.s32.totalorder %s1301_s0, %s1295_s26 }
  0x6a   : > { %772 = vperm.xlu0 %1216, %v742_v33   ;;  %v750_v36 = vrot.slane %v733_v34, %v1620_v23 }
  0x6b   : > { %v766_v43 = vrot.slane %v734_v41, %v1620_v23  ;;  %p1297_p12 = pnand %p1296_p13, %p1845_p2  ;;  %p1304_p9 = por %p1303_p8, %p1302_p7 }
  0x6c   : > { %776 = vperm.xlu1 %1217, %v746_v35  }
  0x6d   : > { %p1298_p10 = pneg %p1297_p12 }
  0x6e   : > { %780 = vperm.xlu0 %1216, %v750_v36  }
  0x6f   : > { %p1305_p11 = pnand %p1304_p9, %p1298_p10 }
  0x70   : > { %784 = vperm.xlu1 %1217, %v754_v38  }
  0x72   : > { %788 = vperm.xlu0 %1216, %v758_v40  }
  0x74   : > { %792 = vperm.xlu1 %1217, %v762_v42  }
  0x76   : > { %796 = vperm.xlu0 %1216, %v766_v43  }
  0x78   : > { %469 = vperm.xlu1 %1217, %v465_v44  }
  0x7a   : > { %474 = vperm.xlu0 %1216, %v466_v45  }
  0xde   : > { %v563_v46 = vpop.permute.xlu0 %562 }
  0xdf   : > { %v572_v52 = vmul.f32 %v563_v46, %v1650_v47  ;;  %v570_v54 = vmul.f32 %v563_v46, %v1656_v49  ;;  %v574_v60 = vmul.f32 %v563_v46, %v1666_v56  ;;  %v576_v0 = vmul.f32 %v563_v46, %v1672_v58  ;;  %v1695_v13 = vpop.permute.xlu1 %386 }
  0xe0   : > { %v578_v9 = vmul.f32 %v563_v46, %v1682_v2  ;;  %v580_v17 = vmul.f32 %v563_v46, %v1688_v7  ;;  %v582_v27 = vmul.f32 %v563_v46, %v1700_v19  ;;  %v584_v35 = vmul.f32 %v563_v46, %v1706_v25 }
  0xe2   : > { %v568_v51 = vpop.permute.xlu0 %567 }
  0xe3   : > { %v573_v53 = vmul.f32 %v568_v51, %v1653_v48  ;;  %v571_v55 = vmul.f32 %v568_v51, %v1659_v50  ;;  %v575_v61 = vmul.f32 %v568_v51, %v1669_v57  ;;  %v577_v1 = vmul.f32 %v568_v51, %v1675_v59 }
  0xe4   : > { %v579_v10 = vmul.f32 %v568_v51, %v1685_v3  ;;  %v581_v18 = vmul.f32 %v568_v51, %v1691_v8  ;;  %v583_v28 = vmul.f32 %v568_v51, %v1703_v20  ;;  %v585_v36 = vmul.f32 %v568_v51, %v1709_v26 }
  0xe5   : > { %v593_v62 = vadd.f32 %v573_v53, %v572_v52  ;;  %v586_v63 = vadd.f32 %v571_v55, %v570_v54  ;;  %v600_v4 = vadd.f32 %v575_v61, %v574_v60  ;;  %v607_v12 = vadd.f32 %v577_v1, %v576_v0 }
  0xe6   : > { %v614_v21 = vadd.f32 %v579_v10, %v578_v9  ;;  %v621_v31 = vadd.f32 %v581_v18, %v580_v17  ;;  %v628_v38 = vadd.f32 %v583_v28, %v582_v27  ;;  %v635_v53 = vadd.f32 %v585_v36, %v584_v35 }
  0xe7   : > { %v594_v5 = vrot.slane %v593_v62, 4  ;;  %v587_v6 = vrot.slane %v586_v63, 4  ;;  %v601_v14 = vrot.slane %v600_v4, 4  ;;  %v608_v22 = vrot.slane %v607_v12, 4  ;;  %v769_v32 = vpop.permute.xlu1 %768 }
  0xe8   : > { %v615_v33 = vrot.slane %v614_v21, 4  ;;  %v622_v41 = vrot.slane %v621_v31, 4  ;;  %v800_v45 = vmul.f32 %v769_v32, %v1659_v50  ;;  %v799_v55 = vmul.f32 %v769_v32, %v1656_v49 }
  0xe9   : > { %v595_v15 = vadd.f32 %v594_v5, %v593_v62  ;;  %v588_v16 = vadd.f32 %v587_v6, %v586_v63  ;;  %v602_v24 = vadd.f32 %v601_v14, %v600_v4  ;;  %v609_v34 = vadd.f32 %v608_v22, %v607_v12  ;;  %v773_v42 = vpop.permute.xlu0 %772 }
  0xea   : > { %v616_v43 = vadd.f32 %v615_v33, %v614_v21  ;;  %v802_v44 = vmul.f32 %v773_v42, %v1653_v48  ;;  %v801_v54 = vmul.f32 %v773_v42, %v1650_v47  ;;  %v629_v51 = vrot.slane %v628_v38, 4 }
  0xeb   : > { %v596_v29 = vrot.slane %v595_v15, 2  ;;  %v589_v30 = vrot.slane %v588_v16, 2  ;;  %v603_v37 = vrot.slane %v602_v24, 2  ;;  %v610_v52 = vrot.slane %v609_v34, 2  ;;  %v777_v46 = vpop.permute.xlu1 %776 }
  0xec   : > { %v623_v63 = vadd.f32 %v622_v41, %v621_v31  ;;  %v617_v0 = vrot.slane %v616_v43, 2  ;;  %v822_v1 = vadd.f32 %v802_v44, %v800_v45  ;;  %v804_v5 = vmul.f32 %v777_v46, %v1669_v57 }
  0xed   : > { %v597_v39 = vadd.f32 %v596_v29, %v595_v15  ;;  %v590_v40 = vadd.f32 %v589_v30, %v588_v16  ;;  %v604_v60 = vadd.f32 %v603_v37, %v602_v24  ;;  %v611_v4 = vadd.f32 %v610_v52, %v609_v34  ;;  %v781_v18 = vpop.permute.xlu0 %780 }
  0xee   : > { %v636_v6 = vrot.slane %v635_v53, 4  ;;  %v815_v9 = vadd.f32 %v801_v54, %v799_v55  ;;  %v803_v12 = vmul.f32 %v777_v46, %v1666_v56  ;;  %v630_v14 = vadd.f32 %v629_v51, %v628_v38 }
  0xef   : > { %v598_v61 = vrot.slane %v597_v39, 1  ;;  %v591_v62 = vrot.slane %v590_v40, 1  ;;  %v605_v10 = vrot.slane %v604_v60, 1  ;;  %v624_v17 = vrot.slane %v623_v63, 2  ;;  %v785_v32 = vpop.permute.xlu1 %784 }
  0xf0   : > { %v618_v21 = vadd.f32 %v617_v0, %v616_v43  ;;  %v612_v22 = vrot.slane %v611_v4, 1  ;;  %v806_v24 = vmul.f32 %v781_v18, %v1675_v59  ;;  %v823_v27 = vadd.f32 %v822_v1, %v804_v5 }
  0xf1   : > { %v599_v15 = vadd.f32 %v598_v61, %v597_v39  ;;  %v592_v16 = vadd.f32 %v591_v62, %v590_v40  ;;  %v637_v28 = vadd.f32 %v636_v6, %v635_v53  ;;  %v805_v29 = vmul.f32 %v781_v18, %v1672_v58  ;;  %v789_v45 = vpop.permute.xlu0 %788 }
  0xf2   : > { %v606_v30 = vadd.f32 %v605_v10, %v604_v60  ;;  %v816_v31 = vadd.f32 %v815_v9, %v803_v12  ;;  %v631_v33 = vrot.slane %v630_v14, 2  ;;  %v625_v34 = vadd.f32 %v624_v17, %v623_v63 }
  0xf3   : > { %v651_v35 = vsel %vm650_vm2, %v599_v15, %v592_v16  ;;  %v619_v36 = vrot.slane %v618_v21, 1  ;;  %v613_v37 = vadd.f32 %v612_v22, %v611_v4  ;;  %v808_v38 = vmul.f32 %v785_v32, %v1685_v3  ;;  %v793_v62 = vpop.permute.xlu1 %792 }
  0xf4   : > { %v824_v39 = vadd.f32 %v823_v27, %v806_v24  ;;  %v638_v40 = vrot.slane %v637_v28, 2  ;;  %v807_v41 = vmul.f32 %v785_v32, %v1682_v2  ;;  %v817_v42 = vadd.f32 %v816_v31, %v805_v29 }
  0xf5   : > { %v632_v43 = vadd.f32 %v631_v33, %v630_v14  ;;  %v653_v44 = vsel %vm652_vm3, %v606_v30, %v651_v35  ;;  %v626_v52 = vrot.slane %v625_v34, 1  ;;  %v620_v53 = vadd.f32 %v619_v36, %v618_v21  ;;  %v797_v4 = vpop.permute.xlu0 %796 }
  0xf6   : > { %v810_v54 = vmul.f32 %v789_v45, %v1691_v8  ;;  %v825_v55 = vadd.f32 %v824_v39, %v808_v38  ;;  %v639_v46 = vadd.f32 %v638_v40, %v637_v28  ;;  %v655_v60 = vsel %vm654_vm4, %v613_v37, %v653_v44 }
  0xf7   : > { %v809_v51 = vmul.f32 %v789_v45, %v1688_v7  ;;  %v818_v61 = vadd.f32 %v817_v42, %v807_v41  ;;  %v633_v63 = vrot.slane %v632_v43, 1  ;;  %v627_v0 = vadd.f32 %v626_v52, %v625_v34  ;;  %v470_v32 = vpop.permute.xlu1 %469 }
  0xf8   : > { %v657_v1 = vsel %vm656_vm5, %v620_v53, %v655_v60  ;;  %v812_v5 = vmul.f32 %v793_v62, %v1703_v20  ;;  %v826_v6 = vadd.f32 %v825_v55, %v810_v54  ;;  %v640_v9 = vrot.slane %v639_v46, 1 }
  0xf9   : > { %v811_v10 = vmul.f32 %v793_v62, %v1700_v19  ;;  %v819_v12 = vadd.f32 %v818_v61, %v809_v51  ;;  %v634_v14 = vadd.f32 %v633_v63, %v632_v43  ;;  %v659_v15 = vsel %vm658_vm6, %v627_v0, %v657_v1  ;;  %v475_v27 = vpop.permute.xlu0 %474 }
  0xfa   : > { %v814_v16 = vmul.f32 %v797_v4, %v1709_v26  ;;  %v827_v17 = vadd.f32 %v826_v6, %v812_v5  ;;  %v641_v18 = vadd.f32 %v640_v9, %v639_v46  ;;  %v813_v21 = vmul.f32 %v797_v4, %v1706_v25 }
  0xfb   : > { %v820_v22 = vadd.f32 %v819_v12, %v811_v10  ;;  %v661_v24 = vsel %vm660_vm7, %v634_v14, %v659_v15 }
  0xfc   : > { %v663_v33 = vsel %vm662_vm8, %v641_v18, %v661_v24  ;;  %v828_v35 = vadd.f32 %v827_v17, %v814_v16 }
  0xfd   : > { %v821_v39 = vadd.f32 %v820_v22, %v813_v21 }
 0x137   : > { %v459_v28 = vpop.f32.mrb[0].mxu0 }
 0x138   : > { %v460_v29 = vadd.f32 %v459_v28, %v1695_v13  ;;  %v1128_v30 = vpop.f32.mrb[1].mxu0 }
 0x139   : > { %v1139_v31 = vpop.f32.mrb[0].mxu1 }
 0x13a   : > { %v555_v34 = vadd.f32 %v1139_v31, %v475_v27  ;;  %v549_v36 = vpop.f32.mrb[1].mxu1  ;;  %v665_v37 = vadd.f32 %v663_v33, %v460_v29 }
 0x13b   : > { %v550_v38 = vadd.f32 %v549_v36, %v470_v32 }
 0x13c   : > { %v830_v40 = vadd.f32 %v828_v35, %v555_v34  ;;  %1219 = vtanh.f32 %v665_v37 }
 0x13d   : > { %v829_v41 = vadd.f32 %v821_v39, %v550_v38 }
 0x13e   : > { %1221 = vtanh.f32 %v830_v40 }
 0x13f   : > { %1223 = vtanh.f32 %v829_v41 }
 0x146   : > { %v1220_v42 = vpop.eup %1219 }
 0x147   : > { %v667_v44 = vrot.slane %v1220_v42, 4 }
 0x148   : > { %v1222_v43 = vpop.eup %1221 }
 0x149   : > { %v1224_v45 = vpop.eup %1223  ;;  %v668_v13 = vmax.f32 %v1220_v42, %v667_v44 }
 0x14a   : > { %v833_v52 = vmax.f32 %v1224_v45, %v1222_v43 }
 0x14b   : > { %v669_v53 = vrot.slane %v668_v13, 2 }
 0x14c   : > { %v834_v54 = vrot.slane %v833_v52, 4 }
 0x14d   : > { %v670_v55 = vmax.f32 %v668_v13, %v669_v53 }
 0x14e   : > { %v835_v46 = vmax.f32 %v833_v52, %v834_v54 }
 0x14f   : > { %v671_v60 = vrot.slane %v670_v55, 1 }
 0x150   : > { %v836_v51 = vrot.slane %v835_v46, 2 }
 0x151   : > { %v672_v61 = vmax.f32 %v670_v55, %v671_v60 }
 0x152   : > { %v837_v62 = vmax.f32 %v835_v46, %v836_v51 }
 0x153   : > { %v673_v63 = vsub.f32 %v1220_v42, %v672_v61 }
 0x154   : > { %v838_v0 = vrot.slane %v837_v62, 1 }
 0x155   : > { %v674_v1 = vmul.f32 1.442695, %v673_v63 }
 0x156   : > { %v839_v4 = vmax.f32 %v837_v62, %v838_v0 }
 0x157   : > { %1225 = vpow2.f32 %v674_v1 }
 0x158   : > { %v840_v5 = vsub.f32 %v1224_v45, %v839_v4  ;;  %v841_v6 = vsub.f32 %v1222_v43, %v839_v4 }
 0x15a   : > { %v842_v9 = vmul.f32 1.442695, %v840_v5  ;;  %v844_v10 = vmul.f32 1.442695, %v841_v6 }
 0x15c   : > { %1227 = vpow2.f32 %v842_v9 }
 0x15d   : > { %1229 = vpow2.f32 %v844_v10 }
 0x161   : > { %v1226_v12 = vpop.eup %1225 }
 0x162   : > { %v676_v14 = vrot.slane %v1226_v12, 4 }
 0x164   : > { %v677_v15 = vadd.f32 %v1226_v12, %v676_v14 }
 0x166   : > { %v1228_v16 = vpop.eup %1227  ;;  %v678_v18 = vrot.slane %v677_v15, 2 }
 0x167   : > { %v1230_v17 = vpop.eup %1229 }
 0x168   : > { %v846_v21 = vadd.f32 %v1230_v17, %v1228_v16  ;;  %v679_v22 = vadd.f32 %v678_v18, %v677_v15 }
 0x16a   : > { %v847_v24 = vrot.slane %v846_v21, 4  ;;  %v680_v27 = vrot.slane %v679_v22, 1 }
 0x16c   : > { %v848_v28 = vadd.f32 %v847_v24, %v846_v21  ;;  %v681_v29 = vadd.f32 %v680_v27, %v679_v22 }
 0x16e   : > { %v849_v30 = vrot.slane %v848_v28, 2  ;;  %1231 = vrcp.f32 %v681_v29 }
 0x170   : > { %v850_v31 = vadd.f32 %v849_v30, %v848_v28 }
 0x172   : > { %v851_v32 = vrot.slane %v850_v31, 1 }
 0x174   : > { %v852_v33 = vadd.f32 %v851_v32, %v850_v31 }
 0x176   : > { %1233 = vrcp.f32 %v852_v33 }
 0x178   : > { %v1232_v34 = vpop.eup %1231 }
 0x179   : > { %v683_v35 = vmul.f32 %v1232_v34, %v1226_v12 }
 0x17b   : > { %v857_v36 = vcombine.high %v683_v35, %v683_v35  ;;  %v864_v37 = vrot.slane %v683_v35, %v1601_v11 }
 0x17d   : > { %v871_v38 = vrot.slane %v857_v36, %v1601_v11  ;;  %v872_v39 = vcombine.high %v864_v37, %v864_v37  ;;  %v880_v40 = vrot.slane %v864_v37, %v1601_v11 }
 0x17f   : > { %v894_v42 = vrot.slane %v872_v39, %v1601_v11  ;;  %v902_v43 = vcombine.high %v880_v40, %v880_v40  ;;  %v873_v13 = vcombine.high %v871_v38, %v871_v38  ;;  %v909_v53 = vrot.slane %v880_v40, %v1620_v23 }
 0x180   : > { %v1234_v41 = vpop.eup %1233  ;;  %v887_v55 = vrot.slane %v871_v38, %v1601_v11 }
 0x181   : > { %v854_v44 = vmul.f32 %v1234_v41, %v1228_v16  ;;  %v855_v45 = vmul.f32 %v1234_v41, %v1230_v17  ;;  %v904_v52 = vcombine.high %v894_v42, %v894_v42  ;;  %v913_v54 = vrot.slane %v894_v42, %v1620_v23 }
 0x182   : > { %v917_v46 = vrot.slane %v902_v43, %v1620_v23  ;;  %v901_v61 = vrot.slane %v873_v13, %v1601_v11  ;;  %v946_v63 = vmul.f32 %v909_v53, %v1656_v49  ;;  %v947_v0 = vmul.f32 %v909_v53, %v1659_v50 }
 0x183   : > { %v948_v60 = vmul.f32 %v913_v54, %v1650_v47  ;;  %v949_v51 = vmul.f32 %v913_v54, %v1653_v48  ;;  %v921_v62 = vrot.slane %v904_v52, %v1620_v23  ;;  %v903_v1 = vcombine.high %v887_v55, %v887_v55 }
 0x184   : > { %v925_v4 = vrot.slane %v887_v55, %v1620_v23  ;;  %v950_v5 = vmul.f32 %v917_v46, %v1666_v56  ;;  %v951_v9 = vmul.f32 %v917_v46, %v1669_v57  ;;  %v905_v10 = vcombine.high %v901_v61, %v901_v61 }
 0x185   : > { %v962_v6 = vadd.f32 %v948_v60, %v946_v63  ;;  %v969_v47 = vadd.f32 %v949_v51, %v947_v0  ;;  %v929_v48 = vrot.slane %v901_v61, %v1620_v23  ;;  %v952_v11 = vmul.f32 %v921_v62, %v1672_v58 }
 0x186   : > { %v953_v49 = vmul.f32 %v921_v62, %v1675_v59  ;;  %v933_v50 = vrot.slane %v903_v1, %v1620_v23  ;;  %v954_v15 = vmul.f32 %v925_v4, %v1682_v2  ;;  %v955_v56 = vmul.f32 %v925_v4, %v1685_v3 }
 0x187   : > { %v963_v12 = vadd.f32 %v962_v6, %v950_v5  ;;  %v970_v14 = vadd.f32 %v969_v47, %v951_v9  ;;  %v937_v17 = vrot.slane %v905_v10, %v1620_v23  ;;  %v956_v18 = vmul.f32 %v929_v48, %v1688_v7 }
 0x188   : > { %v957_v58 = vmul.f32 %v929_v48, %v1691_v8  ;;  %v958_v59 = vmul.f32 %v933_v50, %v1700_v19  ;;  %v959_v27 = vmul.f32 %v933_v50, %v1703_v20 }
 0x189   : > { %v964_v16 = vadd.f32 %v963_v12, %v952_v11  ;;  %v971_v57 = vadd.f32 %v970_v14, %v953_v49  ;;  %v960_v28 = vmul.f32 %v937_v17, %v1706_v25  ;;  %v961_v23 = vmul.f32 %v937_v17, %v1709_v26 }
 0x18b   : > { %v965_v21 = vadd.f32 %v964_v16, %v954_v15  ;;  %v972_v22 = vadd.f32 %v971_v57, %v955_v56 }
 0x18d   : > { %v966_v24 = vadd.f32 %v965_v21, %v956_v18  ;;  %v973_v2 = vadd.f32 %v972_v22, %v957_v58 }
 0x18f   : > { %v967_v29 = vadd.f32 %v966_v24, %v958_v59  ;;  %v974_v3 = vadd.f32 %v973_v2, %v959_v27 }
 0x191   : > { %v968_v7 = vadd.f32 %v967_v29, %v960_v28  ;;  %v975_v8 = vadd.f32 %v974_v3, %v961_v23 }
 0x193   : > { %v976_v19 = vmul.f32 %v968_v7, %v854_v44  ;;  %v977_v20 = vmul.f32 %v975_v8, %v855_v45 }
 0x195   : > { %978 = vst [vmem:[%s361_s24] sm:$0xff] %v976_v19  ;;  %979 = vst [vmem:[%s361_s24 + $0x8] sm:$0xff] %v977_v20 }
 0x196   : > { %1308 = shalt.err (!%p1305_p11)
}
 0x197   : > { %s1309_s11 = scalar_lea.hbm %s1768_s13, 256  ;;  %s1313_s19 = scalar_lea.hbm %s1822_s8, 512 }
 0x198   : > { %p1310_p0 = scmp.ne.s32.totalorder %s1768_s13, %s1309_s11  ;;  %p1314_p3 = scmp.lt.u32.totalorder %s1768_s13, %s1822_s8 }
 0x199   : > { %p1315_p5 = scmp.lt.u32.totalorder %s1313_s19, %s1309_s11  ;;  %p1317_p13 = scmp.lt.u32.totalorder %s1309_s11, %s1768_s13 }
 0x19a   : > { %p1311_p4 = pnand %p1310_p0, %p1845_p2 }
 0x19b   : > { %p1316_p6 = por %p1315_p5, %p1314_p3 }
 0x19c   : > { %p1312_p1 = pneg %p1311_p4 }
 0x19d   : > { %p1318_p12 = por %p1317_p13, %p1316_p6 }
 0x19f   : > { %p1319_p10 = pnand %p1318_p12, %p1312_p1 }
 0x1a1   : > { %1322 = shalt.err (!%p1319_p10)
}
 0x1a2   : > { %s1378_s25 = smov 128   ;;  %s1379_s24 = smov 256  }
 0x1a3   : > { %s1380_s20 = smov 8  }
 0x1a4   : > { %1158 = dma.vmem_to_hbm [thread:$0]  (%p1845_p2), %s1770_s29, 256, %s1768_s13, %s981_s9, %s1378_s25, %s1379_s24, %s1380_s20  }
 0x1a5 PF: > { %s1008_s12 = sand.u32 1, %s1353_s27   ;;  %p1846_p7 = scmp.ne.s32.totalorder %s1837_s18, 0 }
 0x1a6   : > { %p1847_p8 = scmp.ge.s32.totalorder %s1365_s30, 2  ;;  %s1009_s26 = scalar_lea.sflag [#allocation4], %s1008_s12 }
 0x1a8   : > { %p1168_p9 = pnand %p1847_p8, %p1846_p7 }
 0x1aa   : > { %1348 = dma.done.wait (!%p1168_p9), %s1009_s26, 256  }
 0x1ab   : > { %1350 = vsyncadd (!%p1168_p9), %s1009_s26, 4294967040  ;;  %s1848_s30 = sld [smem:[#allocation12_spill]]  ;;  %s1849_s15 = sld [smem:[#allocation11_spill]] }
 0x1ac   : > { %s1850_s29 = sld [smem:[#allocation13_spill]]  ;;  %s1851_s27 = smov %s1357_s28 }
 0x1b1   : > { %p24_p11 = scmp.ge.s32.totalorder %s1848_s30, 4   ;;  %s1852_s28 = smov %s1849_s15 }
 0x1b3   :  { %26 = sbr.rel (!%p24_p11) target bundleno = 9 (0x9), region = 110 }
 0x1ba   :  { %1014 = vsyncpa [#allocation3], 1 }
 0x1bb   :  { %1016 = vsyncpa [#allocation3 + $0x1], 1 }
 0x1bc   :  { %1017 = vsyncpa [#allocation6], 1 }
 0x1bd   :  { %1019 = vsyncpa [#allocation6 + $0x1], 1 }
 0x1be   :  { %1020 = vsyncpa [#allocation4], 1 }
 0x1bf   :  { %1022 = vsyncpa [#allocation4 + $0x1], 1 }

</bundles_post_ra>
